<compile_context>
chip_gen: v6e
topology: v6e:2x2x1
jax: 0.10.0
libtpu: 0.0.40
codegen_flags: <defaults>
</compile_context>

<pallas_src>
import functools

import jax
import jax.numpy as jnp
from jax import lax
from jax.experimental import pallas as pl
from jax.experimental.pallas import tpu as pltpu


# ----------------------------- helpers -----------------------------

def _ceil_to(x, m):
    return -(-x // m) * m


def _sublane_quantum(dtype):
    # rows per (8, 128) register tile: 8 for 4-byte dtypes, 16 for bf16, 32 for int8.
    return 8 * max(1, 4 // jnp.dtype(dtype).itemsize)


def _vmem_caps():
    """(vmem_limit_bytes for the compiler, per-step footprint budget) - generation aware."""
    cap = 64 * 1024 * 1024               # conservative default (v7x physical VMEM)
    try:
        cap = int(getattr(pltpu.get_tpu_info(), "vmem_capacity_bytes", cap))
    except Exception:
        pass
    limit = min(cap * 3 // 4, 96 * 1024 * 1024)      # v5e/v6e: 96 MiB, v7x: 48 MiB
    budget = min(cap * 35 // 100, 48 * 1024 * 1024)  # v5e/v6e: ~45 MiB, v7x: ~22 MiB
    return limit, budget


def _footprint_bytes(tl, bt, *, C_in, C_out, C_in_p, C_out_p, K, pad, x_bytes, c_bytes):
    weights = (2 * C_out * K * C_in_p + C_out * K * C_out_p) * c_bytes       # single-buffered
    io = 2 * bt * (C_in * tl * x_bytes + C_out * tl * c_bytes)               # double-buffered x / out
    slabs = bt * (C_in_p + C_out_p) * (pad + tl) * c_bytes                   # persistent staging slabs
    temps = (K * C_in_p + K * C_out_p) * tl * c_bytes + 6 * C_out * tl * 4   # tap stacks + f32 temps
    return weights + io + slabs + temps


def _choose_time_tile(L, budget, fp):
    tl = 2048                                  # HBM-roofline gains flatten past ~1024-2048 lanes
    while tl > 128 and fp(tl, 1) > budget:
        tl //= 2
    if L <= tl:
        return L                               # one full-length tile: no halo carry, no padding
    if L % 128 == 0:                           # prefer a tile that divides L (no pad/slice pass)
        return max(t for t in range(128, tl + 1, 128) if L % t == 0)
    return tl


def _choose_batch_tile(N, tl, C_in, C_out, budget, fp):
    if C_in > 32 or C_out > 32:
        return 1
    for cand in (8, 4, 2):                     # amortize per-step overhead at small channel counts
        if N % cand == 0 and fp(tl, cand) <= budget:
            return cand
    return 1


# ----------------------------- kernel -----------------------------

def _make_temporal_block_kernel(K, dilation, pad, TL, Bt, C_in, C_out,
                                C_in_p, C_out_p, num_t, cdt):
    d = dilation

    def kernel(x_ref, w1_ref, b1_ref, w2_ref, b2_ref, o_ref, xslab_ref, hslab_ref):
        # NOTE: the causal-halo carry assumes the time axis is the LAST (innermost,
        # sequential / "arbitrary") grid axis and that scratch is per-core and
        # re-initialised at t == 0 for every batch block.  Do not reorder the grid.
        t = pl.program_id(1)

        @pl.when(t == 0)
        def _init():
            xslab_ref[...] = jnp.zeros_like(xslab_ref)   # zero halo + zero-padded channel rows
            hslab_ref[...] = jnp.zeros_like(hslab_ref)

        # Stage the current tile next to its carried halo; cast to the compute dtype
        # here (in-kernel) so the wrapper never runs a full-array cast pass over x.
        xslab_ref[:, :C_in, pad:] = x_ref[...].astype(cdt)

        w1 = w1_ref[...]
        b1 = b1_ref[...]
        w2 = w2_ref[...]
        b2 = b2_ref[...]

        for b in range(Bt):   # unrolled at trace time; Bt > 1 amortizes per-step overhead
            # conv1 (+ fused 1x1 residual): K dilated taps stacked on the contraction
            # axis -> one fat MXU matmul.  Tap boundaries are sublane-aligned (C_in_p),
            # so the concat does not force cross-sublane relayouts.
            s1 = jnp.concatenate(
                [xslab_ref[b, :, k * d:k * d + TL] for k in range(K)], axis=0)
            y1 = jnp.dot(w1, s1, preferred_element_type=jnp.float32) + b1
            h = jnp.maximum(y1[:C_out], 0.0)             # relu1 (dropout1 = identity, eval)
            res = y1[C_out:]                             # residual path (1x1 conv / identity)

            hslab_ref[b, :C_out, pad:] = h.astype(cdt)   # halo carried in compute dtype

            # conv2 + relu2 (dropout2 = identity): same K-tap fold on h.
            s2 = jnp.concatenate(
                [hslab_ref[b, :, k * d:k * d + TL] for k in range(K)], axis=0)
            y2 = jnp.dot(w2, s2, preferred_element_type=jnp.float32) + b2
            o_ref[b] = jnp.maximum(jnp.maximum(y2, 0.0) + res, 0.0).astype(o_ref.dtype)

        if num_t > 1:
            # Carry the last `pad` samples into the next time tile (causal context).
            xslab_ref[:, :, :pad] = xslab_ref[:, :, TL:]
            hslab_ref[:, :, :pad] = hslab_ref[:, :, TL:]

    return kernel


# ----------------------------- wrapper -----------------------------

def temporal_block_forward(x, w1, b1, w2, b2, wd=None, bd=None, *,
                           kernel_size, stride, dilation, padding,
                           compute_dtype=None, time_tile=None, batch_tile=None):
    """x: (N, C_in, L).  PyTorch Conv1d layouts: w1 (C_out, C_in, K), w2 (C_out, C_out, K),
    wd (C_out, C_in) or None (identity residual, requires C_in == C_out), biases (C_out,)."""
    assert stride == 1, "causal TCN block uses stride=1"
    N, C_in, L = x.shape
    C_out = w1.shape[0]
    K = kernel_size
    assert padding == (K - 1) * dilation, "TCN requires padding == (K-1)*dilation"
    assert padding >= 1, "padding must be >= 1 (K > 1); Chomp1d is degenerate otherwise"
    pad = padding

    if wd is None:  # PyTorch: downsample is None when n_inputs == n_outputs -> identity residual
        assert C_in == C_out
        wd = jnp.eye(C_out, dtype=w1.dtype)
        bd = jnp.zeros((C_out,), dtype=w1.dtype)

    cdt = jnp.dtype(compute_dtype) if compute_dtype is not None else jnp.dtype(x.dtype)
    sub = _sublane_quantum(cdt)
    C_in_p, C_out_p = _ceil_to(C_in, sub), _ceil_to(C_out, sub)

    vmem_limit, vmem_budget = _vmem_caps()
    fp = functools.partial(_footprint_bytes, C_in=C_in, C_out=C_out, C_in_p=C_in_p,
                           C_out_p=C_out_p, K=K, pad=pad,
                           x_bytes=jnp.dtype(x.dtype).itemsize,
                           c_bytes=jnp.dtype(cdt).itemsize)
    tl = int(time_tile) if time_tile is not None else _choose_time_tile(L, vmem_budget, fp)
    bt = int(batch_tile) if batch_tile is not None else _choose_batch_tile(
        N, tl, C_in, C_out, vmem_budget, fp)
    assert N % bt == 0, "batch tile must divide N"

    num_t = -(-L // tl)
    Lt = num_t * tl
    if num_t > 1:
        assert tl % 128 == 0, "multi-tile mode needs TL % 128 == 0 (lane-dense blocks)"
    if Lt != L:
        # TODO(synk): the ragged last tile could use masked block writes instead of a
        #             pad+slice pass; causality makes the zero tail feed only discarded outputs.
        x = jnp.pad(x, ((0, 0), (0, 0), (0, Lt - L)))

    # Host-side weight prep (tiny, one-time): fold the K dilated taps into one contraction
    # axis, zero-pad each tap to the sublane quantum, and fuse the 1x1 residual conv below
    # tap K-1 (whose input slice is exactly the current, un-shifted tile).
    f32 = jnp.float32
    w1_t = jnp.pad(jnp.transpose(w1.astype(f32), (0, 2, 1)),
                   ((0, 0), (0, 0), (0, C_in_p - C_in)))            # (C_out, K, C_in_p)
    w1_flat = w1_t.reshape(C_out, K * C_in_p)
    wd_blk = jnp.zeros((C_out, K * C_in_p), f32)
    wd_blk = wd_blk.at[:, (K - 1) * C_in_p:(K - 1) * C_in_p + C_in].set(wd.astype(f32))
    w1_big = jnp.concatenate([w1_flat, wd_blk], axis=0).astype(cdt)  # (2*C_out, K*C_in_p)
    b1_big = jnp.concatenate([b1, bd]).reshape(2 * C_out, 1).astype(f32)
    w2_big = jnp.pad(jnp.transpose(w2.astype(f32), (0, 2, 1)),
                     ((0, 0), (0, 0), (0, C_out_p - C_out))
                     ).reshape(C_out, K * C_out_p).astype(cdt)
    b2_c = b2.reshape(C_out, 1).astype(f32)

    kernel = _make_temporal_block_kernel(K, dilation, pad, tl, bt, C_in, C_out,
                                         C_in_p, C_out_p, num_t, cdt)

    # Constant-index weight/bias blocks never change across the grid -> single-buffer them.
    const_spec = dict(pipeline_mode=pl.Buffered(1)) if hasattr(pl, "Buffered") else {}

    out = pl.pallas_call(
        kernel,
        out_shape=jax.ShapeDtypeStruct((N, C_out, Lt), cdt),
        grid_spec=pltpu.PrefetchScalarGridSpec(
            num_scalar_prefetch=0,
            # Halo-carry invariant: batch-block axis outer ("parallel" is fine, scratch is
            # per-core), time axis innermost and sequential ("arbitrary").
            grid=(N // bt, num_t),
            in_specs=[
                pl.BlockSpec((bt, C_in, tl), lambda nb, t: (nb, 0, t)),
                pl.BlockSpec((2 * C_out, K * C_in_p), lambda nb, t: (0, 0), **const_spec),
                pl.BlockSpec((2 * C_out, 1), lambda nb, t: (0, 0), **const_spec),
                pl.BlockSpec((C_out, K * C_out_p), lambda nb, t: (0, 0), **const_spec),
                pl.BlockSpec((C_out, 1), lambda nb, t: (0, 0), **const_spec),
            ],
            out_specs=pl.BlockSpec((bt, C_out, tl), lambda nb, t: (nb, 0, t)),
            scratch_shapes=[
                pltpu.VMEM((bt, C_in_p, pad + tl), cdt),   # [causal halo | x tile] staging slab
                pltpu.VMEM((bt, C_out_p, pad + tl), cdt),  # [causal halo | conv1-out] staging slab
            ],
        ),
        compiler_params=pltpu.CompilerParams(
            dimension_semantics=("parallel", "arbitrary"),
            vmem_limit_bytes=vmem_limit,
        ),
    )(x, w1_big, b1_big, w2_big, b2_c)

    return out[:, :, :L] if Lt != L else out


# ------------------------- plain-JAX glue & reference -------------------------

def weight_norm_weight(v, g):
    """PyTorch weight_norm (dim=0): w = g * v / ||v||, norm over all non-output dims."""
    norm = jnp.sqrt(jnp.sum(v * v, axis=tuple(range(1, v.ndim)), keepdims=True))
    return g.reshape((-1,) + (1,) * (v.ndim - 1)) * v / norm


def ref_temporal_block(x, w1, b1, w2, b2, wd, bd, *, dilation, padding):
    dn = ('NCH', 'OIH', 'NCH')

    def conv_chomp(inp, w, b):
        y = lax.conv_general_dilated(inp, w, window_strides=(1,),
                                     padding=[(padding, padding)],
                                     rhs_dilation=(dilation,),
                                     dimension_numbers=dn)
        y = y[:, :, :-padding]                 # Chomp1d
        return y + b.reshape(1, -1, 1)

    h = jax.nn.relu(conv_chomp(x, w1, b1))     # dropout == identity (eval)
    out = jax.nn.relu(conv_chomp(h, w2, b2))
    res = lax.conv_general_dilated(x, wd[:, :, None], (1,), [(0, 0)],
                                   dimension_numbers=dn) + bd.reshape(1, -1, 1)
    return jax.nn.relu(out + res)


# ------------------------------------ demo ------------------------------------

if __name__ == "__main__":
    # TemporalBlock(n_inputs=4, n_outputs=8, kernel_size=3, stride=1, dilation=2, padding=4)
    C_in, C_out = 4, 8
    K, stride, dilation = 3, 1, 2
    padding = (K - 1) * dilation

    key = jax.random.PRNGKey(0)
    kp, kx1, kx2, kx3, kw = jax.random.split(key, 5)
    ks = jax.random.split(kp, 8)
    v1 = jax.random.normal(ks[0], (C_out, C_in, K), jnp.float32)
    g1 = jax.random.uniform(ks[1], (C_out,), jnp.float32, 0.5, 1.5)
    b1 = 0.1 * jax.random.normal(ks[2], (C_out,), jnp.float32)
    v2 = jax.random.normal(ks[3], (C_out, C_out, K), jnp.float32)
    g2 = jax.random.uniform(ks[4], (C_out,), jnp.float32, 0.5, 1.5)
    b2 = 0.1 * jax.random.normal(ks[5], (C_out,), jnp.float32)
    wd = jax.random.normal(ks[6], (C_out, C_in), jnp.float32)
    bd = 0.1 * jax.random.normal(ks[7], (C_out,), jnp.float32)

    w1 = weight_norm_weight(v1, g1)   # weight-norm reparameterisation (glue, outside kernel)
    w2 = weight_norm_weight(v2, g2)

    run = functools.partial(temporal_block_forward, kernel_size=K, stride=stride,
                            dilation=dilation, padding=padding)
    ref = functools.partial(ref_temporal_block, dilation=dilation, padding=padding)

    # 1) Small single-tile case (module example sizes), f32, batch-blocked (Bt = 2).
    N, L = 2, 16
    x = jax.random.normal(kx1, (N, C_in, L), jnp.float32)
    out = jax.block_until_ready(run(x, w1, b1, w2, b2, wd, bd))
    assert out.shape == (N, C_out, L)
    ref1 = ref(x, w1, b1, w2, b2, wd, bd)
    err = float(jnp.max(jnp.abs(out - ref1)))
    assert err < 1e-3, f"f32 single-tile max abs err = {err}"

    # 2) Time-tiled path (causal halo carried across tiles): L = 384, forced TL = 128.
    N2, L2 = 2, 384
    x2 = jax.random.normal(kx2, (N2, C_in, L2), jnp.float32)
    out2 = jax.block_until_ready(run(x2, w1, b1, w2, b2, wd, bd, time_tile=128))
    assert out2.shape == (N2, C_out, L2)
    err2 = float(jnp.max(jnp.abs(out2 - ref(x2, w1, b1, w2, b2, wd, bd))))
    assert err2 < 1e-3, f"f32 tiled max abs err = {err2}"

    # 3) Ragged sequence length (pad + slice fallback): L = 200, TL = 128.
    N3, L3 = 2, 200
    x3 = jax.random.normal(kx3, (N3, C_in, L3), jnp.float32)
    out3 = jax.block_until_ready(run(x3, w1, b1, w2, b2, wd, bd, time_tile=128))
    assert out3.shape == (N3, C_out, L3)
    err3 = float(jnp.max(jnp.abs(out3 - ref(x3, w1, b1, w2, b2, wd, bd))))
    assert err3 < 1e-3, f"f32 ragged max abs err = {err3}"

    # 4) bf16 operands / f32 accumulation (v6e / v7x perf mode): checked vs the f32 reference.
    out_bf = jax.block_until_ready(run(x, w1, b1, w2, b2, wd, bd,
                                       compute_dtype=jnp.bfloat16))
    assert out_bf.shape == (N, C_out, L)
    err_bf = float(jnp.max(jnp.abs(out_bf.astype(jnp.float32) - ref1)))
    tol_bf = 0.15 * float(jnp.max(jnp.abs(ref1))) + 0.1
    assert err_bf < tol_bf, f"bf16 max abs err = {err_bf} (tol {tol_bf})"

    # 5) Identity residual (n_inputs == n_outputs -> downsample is None in the module).
    v1e = jax.random.normal(jax.random.fold_in(kw, 0), (C_out, C_out, K), jnp.float32)
    w1e = weight_norm_weight(v1e, g1)
    xe = jax.random.normal(jax.random.fold_in(kw, 1), (N, C_out, L), jnp.float32)
    oute = jax.block_until_ready(run(xe, w1e, b1, w2, b2, None, None))
    refe = ref(xe, w1e, b1, w2, b2, jnp.eye(C_out, dtype=jnp.float32),
               jnp.zeros((C_out,), jnp.float32))
    erre = float(jnp.max(jnp.abs(oute - refe)))
    assert erre < 1e-3, f"f32 identity-residual max abs err = {erre}"

    print("KERNEL_OK")
</pallas_src>

<mosaic_0001>
module attributes {stable_mosaic.version = 11 : i64} {
  func.func @kernel(%arg0: i32, %arg1: i32, %arg2: memref<2x4x16xf32, #tpu.memory_space<vmem>>, %arg3: memref<16x24xf32, #tpu.memory_space<vmem>>, %arg4: memref<16x1xf32, #tpu.memory_space<vmem>>, %arg5: memref<8x24xf32, #tpu.memory_space<vmem>>, %arg6: memref<8x1xf32, #tpu.memory_space<vmem>>, %arg7: memref<2x8x16xf32, #tpu.memory_space<vmem>>, %arg8: memref<2x8x20xf32, #tpu.memory_space<vmem>>, %arg9: memref<2x8x20xf32, #tpu.memory_space<vmem>>) attributes {dimension_semantics = [#tpu.dimension_semantics<parallel>, #tpu.dimension_semantics<arbitrary>], iteration_bounds = array<i64: 1, 1>, scalar_prefetch = 0 : i64, scratch_operands = 2 : i64, tpu.core_type = #tpu.core_type<tc>, window_params = [{transform_indices = @transform_0, window_bounds = array<i64: 2, 4, 16>}, {pipeline_mode = #tpu.pipeline_mode<synchronous>, transform_indices = @transform_1, window_bounds = array<i64: 16, 24>}, {pipeline_mode = #tpu.pipeline_mode<synchronous>, transform_indices = @transform_2, window_bounds = array<i64: 16, 1>}, {pipeline_mode = #tpu.pipeline_mode<synchronous>, transform_indices = @transform_3, window_bounds = array<i64: 8, 24>}, {pipeline_mode = #tpu.pipeline_mode<synchronous>, transform_indices = @transform_4, window_bounds = array<i64: 8, 1>}, {transform_indices = @transform_5, window_bounds = array<i64: 2, 8, 16>}]} {
    %c0_i32 = arith.constant 0 : i32
    %0 = arith.cmpi eq, %arg1, %c0_i32 : i32
    %1 = arith.extui %0 : i1 to i32
    %c0_i32_0 = arith.constant 0 : i32
    %2 = arith.cmpi ne, %1, %c0_i32_0 : i32
    scf.if %2 {
      %cst_68 = arith.constant 0.000000e+00 : f32
      %79 = vector.broadcast %cst_68 : f32 to vector<2x8x20xf32>
      %c0_69 = arith.constant 0 : index
      %c0_70 = arith.constant 0 : index
      %c0_71 = arith.constant 0 : index
      %80 = vector.load %arg8[%c0_69, %c0_70, %c0_71] : memref<2x8x20xf32, #tpu.memory_space<vmem>>, vector<2x8x20xf32>
      tpu.vector_store %arg8[%c0_69, %c0_70, %c0_71], %79 {strides = array<i32>} : memref<2x8x20xf32, #tpu.memory_space<vmem>>, vector<2x8x20xf32>,
      %cst_72 = arith.constant 0.000000e+00 : f32
      %81 = vector.broadcast %cst_72 : f32 to vector<2x8x20xf32>
      %c0_73 = arith.constant 0 : index
      %c0_74 = arith.constant 0 : index
      %c0_75 = arith.constant 0 : index
      %82 = vector.load %arg9[%c0_73, %c0_74, %c0_75] : memref<2x8x20xf32, #tpu.memory_space<vmem>>, vector<2x8x20xf32>
      tpu.vector_store %arg9[%c0_73, %c0_74, %c0_75], %81 {strides = array<i32>} : memref<2x8x20xf32, #tpu.memory_space<vmem>>, vector<2x8x20xf32>,
    } else {
    }
    %c0 = arith.constant 0 : index
    %c0_1 = arith.constant 0 : index
    %c0_2 = arith.constant 0 : index
    %3 = vector.load %arg2[%c0, %c0_1, %c0_2] : memref<2x4x16xf32, #tpu.memory_space<vmem>>, vector<2x4x16xf32>
    %c0_3 = arith.constant 0 : index
    %c0_4 = arith.constant 0 : index
    %c4 = arith.constant 4 : index
    %4 = vector.load %arg8[%c0_3, %c0_4, %c4] : memref<2x8x20xf32, #tpu.memory_space<vmem>>, vector<2x4x16xf32>
    tpu.vector_store %arg8[%c0_3, %c0_4, %c4], %3 {strides = array<i32>} : memref<2x8x20xf32, #tpu.memory_space<vmem>>, vector<2x4x16xf32>,
    %c0_5 = arith.constant 0 : index
    %c0_6 = arith.constant 0 : index
    %5 = vector.load %arg3[%c0_5, %c0_6] : memref<16x24xf32, #tpu.memory_space<vmem>>, vector<16x24xf32>
    %c0_7 = arith.constant 0 : index
    %c0_8 = arith.constant 0 : index
    %6 = vector.load %arg4[%c0_7, %c0_8] : memref<16x1xf32, #tpu.memory_space<vmem>>, vector<16x1xf32>
    %c0_9 = arith.constant 0 : index
    %c0_10 = arith.constant 0 : index
    %7 = vector.load %arg5[%c0_9, %c0_10] : memref<8x24xf32, #tpu.memory_space<vmem>>, vector<8x24xf32>
    %c0_11 = arith.constant 0 : index
    %c0_12 = arith.constant 0 : index
    %8 = vector.load %arg6[%c0_11, %c0_12] : memref<8x1xf32, #tpu.memory_space<vmem>>, vector<8x1xf32>
    %c0_13 = arith.constant 0 : index
    %c0_14 = arith.constant 0 : index
    %c0_15 = arith.constant 0 : index
    %9 = vector.load %arg8[%c0_13, %c0_14, %c0_15] : memref<2x8x20xf32, #tpu.memory_space<vmem>>, vector<1x8x16xf32>
    %10 = vector.shape_cast %9 : vector<1x8x16xf32> to vector<8x16xf32>
    %c0_16 = arith.constant 0 : index
    %c0_17 = arith.constant 0 : index
    %c2 = arith.constant 2 : index
    %11 = vector.load %arg8[%c0_16, %c0_17, %c2] : memref<2x8x20xf32, #tpu.memory_space<vmem>>, vector<1x8x16xf32>
    %12 = vector.shape_cast %11 : vector<1x8x16xf32> to vector<8x16xf32>
    %c0_18 = arith.constant 0 : index
    %c0_19 = arith.constant 0 : index
    %c4_20 = arith.constant 4 : index
    %13 = vector.load %arg8[%c0_18, %c0_19, %c4_20] : memref<2x8x20xf32, #tpu.memory_space<vmem>>, vector<1x8x16xf32>
    %14 = vector.shape_cast %13 : vector<1x8x16xf32> to vector<8x16xf32>
    %15 = tpu.concatenate %10, %12, %14 in 0 : vector<8x16xf32>, vector<8x16xf32>, vector<8x16xf32> -> vector<24x16xf32>
    %cst = arith.constant dense<0.000000e+00> : vector<16x16xf32>
    %16 = tpu.matmul %5, %15, %cst {dimension_numbers = #tpu.dot_dimension_numbers<[1], [0], [0], [1], [0, 0, 1, 1], [], []>} : vector<16x24xf32>, vector<24x16xf32>, vector<16x16xf32> -> vector<16x16xf32>
    %17 = vector.broadcast %6 : vector<16x1xf32> to vector<16x16xf32>
    %18 = arith.addf %16, %17 : vector<16x16xf32>
    %19 = vector.extract_strided_slice %18 {offsets = [0, 0], sizes = [8, 16], strides = [1, 1]} : vector<16x16xf32> to vector<8x16xf32>
    %cst_21 = arith.constant 0.000000e+00 : f32
    %20 = vector.broadcast %cst_21 : f32 to vector<8x16xf32>
    %21 = arith.maximumf %19, %20 : vector<8x16xf32>
    %22 = vector.extract_strided_slice %18 {offsets = [8, 0], sizes = [8, 16], strides = [1, 1]} : vector<16x16xf32> to vector<8x16xf32>
    %c0_22 = arith.constant 0 : index
    %c0_23 = arith.constant 0 : index
    %c4_24 = arith.constant 4 : index
    %23 = vector.load %arg9[%c0_22, %c0_23, %c4_24] : memref<2x8x20xf32, #tpu.memory_space<vmem>>, vector<1x8x16xf32>
    %24 = vector.shape_cast %23 : vector<1x8x16xf32> to vector<8x16xf32>
    %25 = vector.shape_cast %21 : vector<8x16xf32> to vector<1x8x16xf32>
    tpu.vector_store %arg9[%c0_22, %c0_23, %c4_24], %25 {strides = array<i32>} : memref<2x8x20xf32, #tpu.memory_space<vmem>>, vector<1x8x16xf32>,
    %c0_25 = arith.constant 0 : index
    %c0_26 = arith.constant 0 : index
    %c0_27 = arith.constant 0 : index
    %26 = vector.load %arg9[%c0_25, %c0_26, %c0_27] : memref<2x8x20xf32, #tpu.memory_space<vmem>>, vector<1x8x16xf32>
    %27 = vector.shape_cast %26 : vector<1x8x16xf32> to vector<8x16xf32>
    %c0_28 = arith.constant 0 : index
    %c0_29 = arith.constant 0 : index
    %c2_30 = arith.constant 2 : index
    %28 = vector.load %arg9[%c0_28, %c0_29, %c2_30] : memref<2x8x20xf32, #tpu.memory_space<vmem>>, vector<1x8x16xf32>
    %29 = vector.shape_cast %28 : vector<1x8x16xf32> to vector<8x16xf32>
    %c0_31 = arith.constant 0 : index
    %c0_32 = arith.constant 0 : index
    %c4_33 = arith.constant 4 : index
    %30 = vector.load %arg9[%c0_31, %c0_32, %c4_33] : memref<2x8x20xf32, #tpu.memory_space<vmem>>, vector<1x8x16xf32>
    %31 = vector.shape_cast %30 : vector<1x8x16xf32> to vector<8x16xf32>
    %32 = tpu.concatenate %27, %29, %31 in 0 : vector<8x16xf32>, vector<8x16xf32>, vector<8x16xf32> -> vector<24x16xf32>
    %cst_34 = arith.constant dense<0.000000e+00> : vector<8x16xf32>
    %33 = tpu.matmul %7, %32, %cst_34 {dimension_numbers = #tpu.dot_dimension_numbers<[1], [0], [0], [1], [0, 0, 1, 1], [], []>} : vector<8x24xf32>, vector<24x16xf32>, vector<8x16xf32> -> vector<8x16xf32>
    %34 = vector.broadcast %8 : vector<8x1xf32> to vector<8x16xf32>
    %35 = arith.addf %33, %34 : vector<8x16xf32>
    %cst_35 = arith.constant 0.000000e+00 : f32
    %36 = vector.broadcast %cst_35 : f32 to vector<8x16xf32>
    %37 = arith.maximumf %35, %36 : vector<8x16xf32>
    %38 = arith.addf %37, %22 : vector<8x16xf32>
    %cst_36 = arith.constant 0.000000e+00 : f32
    %39 = vector.broadcast %cst_36 : f32 to vector<8x16xf32>
    %40 = arith.maximumf %38, %39 : vector<8x16xf32>
    %c0_37 = arith.constant 0 : index
    %c0_38 = arith.constant 0 : index
    %c0_39 = arith.constant 0 : index
    %41 = vector.load %arg7[%c0_37, %c0_38, %c0_39] : memref<2x8x16xf32, #tpu.memory_space<vmem>>, vector<1x8x16xf32>
    %42 = vector.shape_cast %41 : vector<1x8x16xf32> to vector<8x16xf32>
    %43 = vector.shape_cast %40 : vector<8x16xf32> to vector<1x8x16xf32>
    tpu.vector_store %arg7[%c0_37, %c0_38, %c0_39], %43 {strides = array<i32>} : memref<2x8x16xf32, #tpu.memory_space<vmem>>, vector<1x8x16xf32>,
    %c1 = arith.constant 1 : index
    %c0_40 = arith.constant 0 : index
    %c0_41 = arith.constant 0 : index
    %44 = vector.load %arg8[%c1, %c0_40, %c0_41] : memref<2x8x20xf32, #tpu.memory_space<vmem>>, vector<1x8x16xf32>
    %45 = vector.shape_cast %44 : vector<1x8x16xf32> to vector<8x16xf32>
    %c1_42 = arith.constant 1 : index
    %c0_43 = arith.constant 0 : index
    %c2_44 = arith.constant 2 : index
    %46 = vector.load %arg8[%c1_42, %c0_43, %c2_44] : memref<2x8x20xf32, #tpu.memory_space<vmem>>, vector<1x8x16xf32>
    %47 = vector.shape_cast %46 : vector<1x8x16xf32> to vector<8x16xf32>
    %c1_45 = arith.constant 1 : index
    %c0_46 = arith.constant 0 : index
    %c4_47 = arith.constant 4 : index
    %48 = vector.load %arg8[%c1_45, %c0_46, %c4_47] : memref<2x8x20xf32, #tpu.memory_space<vmem>>, vector<1x8x16xf32>
    %49 = vector.shape_cast %48 : vector<1x8x16xf32> to vector<8x16xf32>
    %50 = tpu.concatenate %45, %47, %49 in 0 : vector<8x16xf32>, vector<8x16xf32>, vector<8x16xf32> -> vector<24x16xf32>
    %cst_48 = arith.constant dense<0.000000e+00> : vector<16x16xf32>
    %51 = tpu.matmul %5, %50, %cst_48 {dimension_numbers = #tpu.dot_dimension_numbers<[1], [0], [0], [1], [0, 0, 1, 1], [], []>} : vector<16x24xf32>, vector<24x16xf32>, vector<16x16xf32> -> vector<16x16xf32>
    %52 = vector.broadcast %6 : vector<16x1xf32> to vector<16x16xf32>
    %53 = arith.addf %51, %52 : vector<16x16xf32>
    %54 = vector.extract_strided_slice %53 {offsets = [0, 0], sizes = [8, 16], strides = [1, 1]} : vector<16x16xf32> to vector<8x16xf32>
    %cst_49 = arith.constant 0.000000e+00 : f32
    %55 = vector.broadcast %cst_49 : f32 to vector<8x16xf32>
    %56 = arith.maximumf %54, %55 : vector<8x16xf32>
    %57 = vector.extract_strided_slice %53 {offsets = [8, 0], sizes = [8, 16], strides = [1, 1]} : vector<16x16xf32> to vector<8x16xf32>
    %c1_50 = arith.constant 1 : index
    %c0_51 = arith.constant 0 : index
    %c4_52 = arith.constant 4 : index
    %58 = vector.load %arg9[%c1_50, %c0_51, %c4_52] : memref<2x8x20xf32, #tpu.memory_space<vmem>>, vector<1x8x16xf32>
    %59 = vector.shape_cast %58 : vector<1x8x16xf32> to vector<8x16xf32>
    %60 = vector.shape_cast %56 : vector<8x16xf32> to vector<1x8x16xf32>
    tpu.vector_store %arg9[%c1_50, %c0_51, %c4_52], %60 {strides = array<i32>} : memref<2x8x20xf32, #tpu.memory_space<vmem>>, vector<1x8x16xf32>,
    %c1_53 = arith.constant 1 : index
    %c0_54 = arith.constant 0 : index
    %c0_55 = arith.constant 0 : index
    %61 = vector.load %arg9[%c1_53, %c0_54, %c0_55] : memref<2x8x20xf32, #tpu.memory_space<vmem>>, vector<1x8x16xf32>
    %62 = vector.shape_cast %61 : vector<1x8x16xf32> to vector<8x16xf32>
    %c1_56 = arith.constant 1 : index
    %c0_57 = arith.constant 0 : index
    %c2_58 = arith.constant 2 : index
    %63 = vector.load %arg9[%c1_56, %c0_57, %c2_58] : memref<2x8x20xf32, #tpu.memory_space<vmem>>, vector<1x8x16xf32>
    %64 = vector.shape_cast %63 : vector<1x8x16xf32> to vector<8x16xf32>
    %c1_59 = arith.constant 1 : index
    %c0_60 = arith.constant 0 : index
    %c4_61 = arith.constant 4 : index
    %65 = vector.load %arg9[%c1_59, %c0_60, %c4_61] : memref<2x8x20xf32, #tpu.memory_space<vmem>>, vector<1x8x16xf32>
    %66 = vector.shape_cast %65 : vector<1x8x16xf32> to vector<8x16xf32>
    %67 = tpu.concatenate %62, %64, %66 in 0 : vector<8x16xf32>, vector<8x16xf32>, vector<8x16xf32> -> vector<24x16xf32>
    %cst_62 = arith.constant dense<0.000000e+00> : vector<8x16xf32>
    %68 = tpu.matmul %7, %67, %cst_62 {dimension_numbers = #tpu.dot_dimension_numbers<[1], [0], [0], [1], [0, 0, 1, 1], [], []>} : vector<8x24xf32>, vector<24x16xf32>, vector<8x16xf32> -> vector<8x16xf32>
    %69 = vector.broadcast %8 : vector<8x1xf32> to vector<8x16xf32>
    %70 = arith.addf %68, %69 : vector<8x16xf32>
    %cst_63 = arith.constant 0.000000e+00 : f32
    %71 = vector.broadcast %cst_63 : f32 to vector<8x16xf32>
    %72 = arith.maximumf %70, %71 : vector<8x16xf32>
    %73 = arith.addf %72, %57 : vector<8x16xf32>
    %cst_64 = arith.constant 0.000000e+00 : f32
    %74 = vector.broadcast %cst_64 : f32 to vector<8x16xf32>
    %75 = arith.maximumf %73, %74 : vector<8x16xf32>
    %c1_65 = arith.constant 1 : index
    %c0_66 = arith.constant 0 : index
    %c0_67 = arith.constant 0 : index
    %76 = vector.load %arg7[%c1_65, %c0_66, %c0_67] : memref<2x8x16xf32, #tpu.memory_space<vmem>>, vector<1x8x16xf32>
    %77 = vector.shape_cast %76 : vector<1x8x16xf32> to vector<8x16xf32>
    %78 = vector.shape_cast %75 : vector<8x16xf32> to vector<1x8x16xf32>
    tpu.vector_store %arg7[%c1_65, %c0_66, %c0_67], %78 {strides = array<i32>} : memref<2x8x16xf32, #tpu.memory_space<vmem>>, vector<1x8x16xf32>,
    return
  }
  func.func @transform_0(%arg0: i32, %arg1: i32) -> (i32, i32, i32) {
    %c0_i32 = arith.constant 0 : i32
    %c0_i32_0 = arith.constant 0 : i32
    return %arg0, %c0_i32, %arg1 : i32, i32, i32
  }
  func.func @transform_1(%arg0: i32, %arg1: i32) -> (i32, i32) {
    %c0_i32 = arith.constant 0 : i32
    %c0_i32_0 = arith.constant 0 : i32
    %c0_i32_1 = arith.constant 0 : i32
    return %c0_i32, %c0_i32_0 : i32, i32
  }
  func.func @transform_2(%arg0: i32, %arg1: i32) -> (i32, i32) {
    %c0_i32 = arith.constant 0 : i32
    %c0_i32_0 = arith.constant 0 : i32
    %c0_i32_1 = arith.constant 0 : i32
    return %c0_i32, %c0_i32_0 : i32, i32
  }
  func.func @transform_3(%arg0: i32, %arg1: i32) -> (i32, i32) {
    %c0_i32 = arith.constant 0 : i32
    %c0_i32_0 = arith.constant 0 : i32
    %c0_i32_1 = arith.constant 0 : i32
    return %c0_i32, %c0_i32_0 : i32, i32
  }
  func.func @transform_4(%arg0: i32, %arg1: i32) -> (i32, i32) {
    %c0_i32 = arith.constant 0 : i32
    %c0_i32_0 = arith.constant 0 : i32
    %c0_i32_1 = arith.constant 0 : i32
    return %c0_i32, %c0_i32_0 : i32, i32
  }
  func.func @transform_5(%arg0: i32, %arg1: i32) -> (i32, i32, i32) {
    %c0_i32 = arith.constant 0 : i32
    %c0_i32_0 = arith.constant 0 : i32
    return %arg0, %c0_i32, %arg1 : i32, i32, i32
  }
}

</mosaic_0001>

<bundles_post_ra>
// kernel: tpu_custom_call.1
= control target key start
LH: loop header
LB: loop body
LE: loop exit
PB: predicated region body
PF: predicated region fallthrough
CT: control target
= control target key end

     0   :  { %10 = vsyncpa [#allocation5], 0  ;;  %s665_s0 = inlined_call_operand.vmem [shape: f32[2,4,16], index: 0, kind: input, shape index: {}]   ;;  %s666_s1 = inlined_call_operand.vmem [shape: f32[16,24], index: 1, kind: input, shape index: {}]   ;;  %s667_s2 = inlined_call_operand.vmem [shape: f32[16,1], index: 2, kind: input, shape index: {}]   ;;  %s668_s3 = inlined_call_operand.hbm [shape: f32[8,24], index: 3, kind: input, shape index: {}]   ;;  %s669_s4 = inlined_call_operand.vmem [shape: f32[8,1], index: 4, kind: input, shape index: {}]   ;;  %s670_s5 = inlined_call_operand.hbm [shape: f32[2,8,16], index: 5, kind: output, shape index: {}]  }
   0x1   :  { %11 = vsyncpa [#allocation6], 0  ;;  %s566_s18 = smov [#allocation4]  }
   0x2   :  { %s24_s19 = sshll.u32 %s566_s18, 4  ;;  %s25_s19 = int_to_ptr.vmem [resolvable:$true] %s24_s19 }
   0x3   :  { %s530_s20 = scalar_lea.vmem %s25_s19, 128  ;;  %p535_p1 = scmp.lt.s32.totalorder %s25_s19, %s25_s19 }
   0x4   :  { %p531_p0 = scmp.ne.s32.totalorder %s25_s19, %s530_s20  ;;  %p536_p2 = scmp.lt.s32.totalorder %s530_s20, %s530_s20 }
   0x6   :  { %p537_p3 = por %p536_p2, %p535_p1 }
   0x8   :  { %p538_p4 = pnand %p537_p3, %p531_p0 }
   0xa   :  { %541 = shalt.err (!%p538_p4)
}
   0xb   :  { %27 = dma.hbm_to_vmem [thread:$0]  %s668_s3, 128, %s25_s19, [#allocation5]  }
   0xc   :  { %562 = dma.done.wait [#allocation5], 128  }
   0xd   :  { %563 = vsyncadd [#allocation5], 4294967168  ;;  %vm37_vm0 = vcmask 162816   ;;  %v567_v0 = vmov 0.0   ;;  %v42_v1 = vld [vmem:[%s665_s0] sm:$0xf] }
   0xe   :  { %38 = vst.msk [vmem:[#allocation2] sm:$0xff] %vm37_vm0, %v567_v0  ;;  %39 = vst.msk [vmem:[#allocation2 + $0x8] sm:$0xff] %vm37_vm0, %v567_v0  ;;  %483 = vmatprep.subr.mxu1 %v567_v0  ;;  %s568_s25 = smov 4   ;;  %v43_v2 = vld [vmem:[%s665_s0 + $0x4] sm:$0xf]  ;;  %vm52_vm1 = vcmask 158752  }
   0xf   :  { %40 = vst.msk [vmem:[#allocation3] sm:$0xff] %vm37_vm0, %v567_v0  ;;  %41 = vst.msk [vmem:[#allocation3 + $0x8] sm:$0xff] %vm37_vm0, %v567_v0  ;;  %46 = vrot.lane.b32.xlu0 %v42_v1, %s568_s25  ;;  %v55_v4 = vld [vmem:[%s666_s1] sm:$0xff]  ;;  %vm79_vm2 = vcmask 195584   ;;  %s569_s29 = smov 124   ;;  %v570_v7 = vmov 0  }
  0x10   :  { %480 = vmatprep.mubr.msk.f32.mxu0 %vm79_vm2, %v55_v4  ;;  %520 = vset.pattern.permute.xlu0 %v570_v7  ;;  %s571_s0 = smov 126   ;;  %v57_v9 = vld [vmem:[%s667_s2] sm:$0xff]  ;;  %v56_v13 = vld [vmem:[%s666_s1 + $0x8] sm:$0xff]  ;;  %vm166_vm3 = vcmask 162848   ;;  %vm572_vm4 = vmmov 0   ;;  %vm257_vm5 = vcmask 130048  }
  0x11   :  { %521 = vset.pattern.permute.xlu1 %v570_v7  ;;  %489 = vmatprep.mubr.msk.f32.mxu1 %vm572_vm4, %v567_v0  ;;  %v58_v28 = vld [vmem:[%s667_s2 + $0x8] sm:$0xff]  ;;  %v60_v29 = vld [vmem:[%s669_s4] sm:$0xff]  ;;  %s573_s2 = smov [#allocation7]  }
  0x12   :  { %v59_v32 = vld [vmem:[#allocation4] sm:$0xff]  ;;  %s438_s4 = sshll.u32 %s573_s2, 4  ;;  %s439_s4 = int_to_ptr.vmem [resolvable:$true] %s438_s4 }
  0x13   :  { %48 = vrot.lane.b32.xlu0 %v43_v2, %s568_s25  ;;  %s542_s12 = scalar_lea.vmem %s439_s4, 256  ;;  %p547_p6 = scmp.lt.s32.totalorder %s439_s4, %s439_s4 }
  0x14   :  { %p543_p5 = scmp.ne.s32.totalorder %s439_s4, %s542_s12  ;;  %p548_p7 = scmp.lt.s32.totalorder %s542_s12, %s542_s12 }
  0x16   :  { %p549_p8 = por %p548_p7, %p547_p6 }
  0x18   :  { %p550_p9 = pnand %p549_p8, %p543_p5 }
  0x81   :  { %v47_v3 = vpop.permute.xlu0 %46 }
  0x82   :  { %53 = vst.msk [vmem:[#allocation2] sm:$0xf] %vm52_vm1, %v47_v3 }
  0x85   :  { %v49_v5 = vpop.permute.xlu0 %48 }
  0x86   :  { %54 = vst.msk [vmem:[#allocation2 + $0x8] sm:$0xf] %vm52_vm1, %v49_v5 }
  0x89   :  { %v61_v6 = vld [vmem:[#allocation2] sm:$0xff] }
  0x8a   :  { %66 = vrot.lane.b32.xlu1 %v61_v6, %s569_s29 }
  0x8d   :  { %v260_v8 = vld [vmem:[#allocation2 + $0x8] sm:$0xff] }
  0x8e   :  { %63 = vrot.lane.b32.xlu1 %v61_v6, %s571_s0  ;;  %265 = vrot.lane.b32.xlu0 %v260_v8, %s569_s29 }
  0x92   :  { %262 = vrot.lane.b32.xlu1 %v260_v8, %s571_s0  ;;  %71 = vperm.xlu0 %520, %v57_v9  }
  0xfc   :  { %v67_v10 = vpop.permute.xlu1 %66 }
  0xfd   :  { %474 = vmatprep.subr.mxu0 %v67_v10 }
  0xfe   :  { %475 = vmatpush3.msra.mxu0 %v67_v10 }
 0x100   :  { %v64_v11 = vpop.permute.xlu1 %63  ;;  %v266_v12 = vpop.permute.xlu0 %265 }
 0x101   :  { %476 = vmatprep.subr.mxu0 %v64_v11 }
 0x102   :  { %477 = vmatpush3.msra.mxu0 %v64_v11 }
 0x103   :  { %478 = vmatprep.subr.mxu0 %v61_v6 }
 0x104   :  { %479 = vmatpush3.msra.mxu0 %v61_v6  ;;  %v263_v14 = vpop.permute.xlu1 %262 }
 0x105   :  { %481 = vmatmul.mubr.msk.f32.vlgmr.msra.gmra.mxu0 %vm79_vm2, %v56_v13  ;;  %492 = vmatprep.subr.mxu0 %v266_v12 }
 0x106   :  { %493 = vmatpush3.msra.mxu0 %v266_v12  ;;  %498 = vmatprep.mubr.msk.f32.mxu0 %vm79_vm2, %v55_v4 }
 0x107   :  { %494 = vmatprep.subr.mxu0 %v263_v14 }
 0x108   :  { %495 = vmatpush3.msra.mxu0 %v263_v14 }
 0x109   :  { %496 = vmatprep.subr.mxu0 %v260_v8 }
 0x10a   :  { %497 = vmatpush3.msra.mxu0 %v260_v8 }
 0x10b   :  { %499 = vmatmul.mubr.msk.f32.vlgmr.msra.gmra.mxu0 %vm79_vm2, %v56_v13 }
 0x10d   :  { %v72_v16 = vpop.permute.xlu0 %71 }
 0x1c5   :  { %v482_v15 = vpop.f32.mrf.mxu0 }
 0x1c7   :  { %v152_v17 = vpop.f32.mrf.mxu0 }
 0x1c8   :  { %v153_v18 = vadd.f32 %v152_v17, %v72_v16 }
 0x1ca   :  { %v161_v19 = vmax.f32 %v153_v18, 0.0 }
 0x1cb   :  { %v500_v20 = vpop.f32.mrf.mxu0 }
 0x1cc   :  { %163 = vrot.lane.b32.xlu1 %v161_v19, %s568_s25 }
 0x1cd   :  { %v334_v21 = vpop.f32.mrf.mxu0 }
 0x1ce   :  { %v335_v22 = vadd.f32 %v334_v21, %v72_v16 }
 0x1d0   :  { %v343_v23 = vmax.f32 %v335_v22, 0.0 }
 0x1d2   :  { %345 = vrot.lane.b32.xlu1 %v343_v23, %s568_s25 }
 0x23e   :  { %v164_v24 = vpop.permute.xlu1 %163 }
 0x23f   :  { %167 = vst.msk [vmem:[#allocation3] sm:$0xff] %vm166_vm3, %v164_v24 }
 0x244   :  { %v346_v25 = vpop.permute.xlu1 %345 }
 0x245   :  { %349 = vst.msk [vmem:[#allocation3 + $0x8] sm:$0xff] %vm166_vm3, %v346_v25 }
 0x246   :  { %v168_v26 = vld [vmem:[#allocation3] sm:$0xff] }
 0x247   :  { %170 = vrot.lane.b32.xlu1 %v168_v26, %s571_s0  ;;  %173 = vrot.lane.b32.xlu0 %v168_v26, %s569_s29 }
 0x24c   :  { %v350_v27 = vld [vmem:[#allocation3 + $0x8] sm:$0xff] }
 0x24d   :  { %352 = vrot.lane.b32.xlu1 %v350_v27, %s571_s0  ;;  %355 = vrot.lane.b32.xlu0 %v350_v27, %s569_s29 }
 0x251   :  { %76 = vperm.xlu1 %521, %v58_v28   ;;  %178 = vperm.xlu0 %520, %v60_v29  }
 0x2b9   :  { %v174_v30 = vpop.permute.xlu0 %173  ;;  %v171_v31 = vpop.permute.xlu1 %170 }
 0x2ba   :  { %484 = vmatpush3.msra.mxu1 %v174_v30 }
 0x2bb   :  { %485 = vmatprep.subr.mxu1 %v567_v0 }
 0x2bc   :  { %486 = vmatpush3.msra.mxu1 %v171_v31 }
 0x2bd   :  { %487 = vmatprep.subr.mxu1 %v567_v0 }
 0x2be   :  { %488 = vmatpush3.msra.mxu1 %v168_v26 }
 0x2bf   :  { %v356_v33 = vpop.permute.xlu0 %355  ;;  %490 = vmatmul.mubr.msk.f32.vlgmr.msra.gmra.mxu1 %vm79_vm2, %v59_v32  ;;  %501 = vmatprep.subr.mxu1 %v567_v0  ;;  %v353_v34 = vpop.permute.xlu1 %352 }
 0x2c0   :  { %502 = vmatpush3.msra.mxu1 %v356_v33  ;;  %507 = vmatprep.mubr.msk.f32.mxu1 %vm572_vm4, %v567_v0 }
 0x2c1   :  { %503 = vmatprep.subr.mxu1 %v567_v0 }
 0x2c2   :  { %504 = vmatpush3.msra.mxu1 %v353_v34 }
 0x2c3   :  { %505 = vmatprep.subr.mxu1 %v567_v0 }
 0x2c4   :  { %506 = vmatpush3.msra.mxu1 %v350_v27 }
 0x2c5   :  { %508 = vmatmul.mubr.msk.f32.vlgmr.msra.gmra.mxu1 %vm79_vm2, %v59_v32 }
 0x2cc   :  { %v179_v35 = vpop.permute.xlu0 %178  ;;  %v77_v36 = vpop.permute.xlu1 %76 }
 0x2cd   :  { %v158_v40 = vadd.f32 %v482_v15, %v77_v36  ;;  %v340_v47 = vadd.f32 %v500_v20, %v77_v36 }
 0x37f   :  { %v250_v37 = vpop.f32.mrf.mxu1 }
 0x380   :  { %v251_v38 = vadd.f32 %v250_v37, %v179_v35 }
 0x381   :  { %v491_v39 = vpop.f32.mrf.mxu1 }
 0x382   :  { %v254_v41 = vmax.f32 %v251_v38, 0.0 }
 0x384   :  { %v255_v42 = vadd.f32 %v254_v41, %v158_v40 }
 0x385   :  { %v424_v43 = vpop.f32.mrf.mxu1 }
 0x386   :  { %v256_v44 = vmax.f32 %v255_v42, 0.0  ;;  %v425_v45 = vadd.f32 %v424_v43, %v179_v35 }
 0x387   :  { %v509_v46 = vpop.f32.mrf.mxu1 }
 0x388   :  { %258 = vst.msk [vmem:[#allocation7] sm:$0xff] %vm257_vm5, %v256_v44  ;;  %v428_v48 = vmax.f32 %v425_v45, 0.0 }
 0x38a   :  { %v429_v49 = vadd.f32 %v428_v48, %v340_v47 }
 0x38c   :  { %v430_v50 = vmax.f32 %v429_v49, 0.0 }
 0x38e   :  { %432 = vst.msk [vmem:[#allocation7 + $0x8] sm:$0xff] %vm257_vm5, %v430_v50 }
 0x38f   :  { %553 = shalt.err (!%p550_p9)
}
 0x390   :  { %s574_s13 = smov 128   ;;  %s575_s14 = smov 8  }
 0x391   :  { %444 = dma.vmem_to_hbm [thread:$0]  %s439_s4, 256, %s670_s5, [#allocation6], %s574_s13, %s574_s13, %s575_s14  }
 0x392   :  { %564 = dma.done.wait [#allocation6], 256  }
 0x393   :  { %565 = vsyncadd [#allocation6], 4294967040 }
 0x394   :  { %448 = vsyncpa [#allocation5], 1 }
 0x395   :  { %449 = vsyncpa [#allocation6], 1 }

</bundles_post_ra>
